<compile_context>
chip_gen: v7x
topology: tpu7x:2x2x1
jax: 0.10.0
libtpu: 0.0.40
codegen_flags: <defaults>
</compile_context>

<pallas_src>
import functools

import jax
import jax.numpy as jnp
from jax.experimental import pallas as pl
from jax.experimental.pallas import tpu as pltpu


def _channel_attention_kernel(x_ref, w1_ref, w2_ref, o_ref, sum_ref, max_ref,
                              *, hw_total):
    # x_ref block:  (bt, C, hw_tile)
    # w1_ref:       (C, Cr)      w2_ref: (Cr, C)
    # o_ref block:  (bt, C)
    # sum_ref/max_ref scratch: (bt, C) f32, resident across the HW grid axis.
    hw_idx = pl.program_id(1)
    hw_steps = pl.num_programs(1)
    bt = o_ref.shape[0]
    hw_tile = x_ref.shape[-1]

    @pl.when(hw_idx == 0)
    def _init():
        sum_ref[...] = jnp.zeros(sum_ref.shape, sum_ref.dtype)
        max_ref[...] = jnp.full(max_ref.shape, -jnp.inf, max_ref.dtype)

    # Per-chunk cast to f32 (no whole-plane cast; bf16 stays bf16 in HBM).
    x = x_ref[...].astype(jnp.float32)                       # (bt, C, hw_tile)

    if hw_total % hw_tile != 0:
        # Last spatial tile is partial: mask the padded lanes.
        start = hw_idx * hw_tile
        lane = jax.lax.broadcasted_iota(jnp.int32, (1, 1, hw_tile), 2)
        valid = (start + lane) < hw_total
        x_sum = jnp.where(valid, x, 0.0)
        x_max = jnp.where(valid, x, -jnp.inf)
    else:
        x_sum = x
        x_max = x

    sum_ref[...] += jnp.sum(x_sum, axis=-1)                            # (bt, C)
    max_ref[...] = jnp.maximum(max_ref[...], jnp.max(x_max, axis=-1))  # (bt, C)

    @pl.when(hw_idx == hw_steps - 1)
    def _finalize():
        avg = sum_ref[...] * (1.0 / float(hw_total))          # (bt, C)
        mx = max_ref[...]                                     # (bt, C)
        pooled = jnp.concatenate([avg, mx], axis=0)           # (2*bt, C)
        w1 = w1_ref[...].astype(jnp.float32)                  # (C, Cr)
        w2 = w2_ref[...].astype(jnp.float32)                  # (Cr, C)
        h = jnp.maximum(
            jnp.dot(pooled, w1, preferred_element_type=jnp.float32), 0.0)
        y = jnp.dot(h, w2, preferred_element_type=jnp.float32)  # (2*bt, C)
        out = jax.nn.sigmoid(y[:bt] + y[bt:])                   # (bt, C)
        o_ref[...] = out.astype(o_ref.dtype)


def channel_attention(x, w1, w2, *, hw_tile=None,
                      max_block_bytes=4 * 1024 * 1024):
    """CBAM channel attention.

    x: (B, C, H, W) NCHW; w1: (C, C//ratio); w2: (C//ratio, C).
    Returns sigmoid(sharedMLP(avg_pool(x)) + sharedMLP(max_pool(x)))
    with shape (B, C, 1, 1), matching the PyTorch module.
    """
    B, C, H, W = x.shape
    Cr = w1.shape[1]
    assert w1.shape == (C, Cr) and w2.shape == (Cr, C)
    HW = H * W
    x_flat = x.reshape(B, C, HW)

    # Batch tile: largest divisor of B up to 8 (denser output stores, MLP
    # amortized over 2*bt rows, per-step overhead amortized).
    bt = max(d for d in range(1, min(B, 8) + 1) if B % d == 0)

    # Spatial tile: multiple of 128 lanes, capped so one x block (times two
    # pipeline buffers, plus weights/scratch) fits comfortably in scoped VMEM
    # on every generation (incl. v7x's 64 MiB physical VMEM).
    if hw_tile is None:
        budget = max(1, max_block_bytes // (bt * C * x.dtype.itemsize))
        hw_tile = max(128, (budget // 128) * 128)
    hw_tile = min(hw_tile, HW)
    if hw_tile != HW:
        hw_tile = max(128, (hw_tile // 128) * 128)
        if hw_tile >= HW:
            hw_tile = HW
    num_hw = pl.cdiv(HW, hw_tile)

    kernel = functools.partial(_channel_attention_kernel, hw_total=HW)

    out = pl.pallas_call(
        kernel,
        out_shape=jax.ShapeDtypeStruct((B, C), x.dtype),
        grid_spec=pltpu.PrefetchScalarGridSpec(
            num_scalar_prefetch=0,
            grid=(B // bt, num_hw),                 # reduction (HW) axis last
            in_specs=[
                pl.BlockSpec((bt, C, hw_tile), lambda b, h: (b, 0, h)),
                pl.BlockSpec((C, Cr), lambda b, h: (0, 0)),   # resident weight
                pl.BlockSpec((Cr, C), lambda b, h: (0, 0)),   # resident weight
            ],
            out_specs=pl.BlockSpec((bt, C), lambda b, h: (b, 0)),
            scratch_shapes=[
                pltpu.VMEM((bt, C), jnp.float32),   # running sum
                pltpu.VMEM((bt, C), jnp.float32),   # running max
            ],
        ),
        compiler_params=pltpu.CompilerParams(
            dimension_semantics=("parallel", "arbitrary"),
            vmem_limit_bytes=32 * 1024 * 1024,
        ),
    )(x_flat, w1, w2)

    return out.reshape(B, C, 1, 1)


def init_params(key, in_planes, ratio=4, dtype=jnp.float32):
    """Shapes mimic the PyTorch module's 1x1 convs (bias=False), stored
    pre-transposed as matmul weights: w1 (C, Cr), w2 (Cr, C)."""
    cr = in_planes // ratio
    k1, k2 = jax.random.split(key)
    conv1_w = jax.random.normal(k1, (cr, in_planes), dtype) * 0.1
    conv2_w = jax.random.normal(k2, (in_planes, cr), dtype) * 0.1
    return conv1_w.T, conv2_w.T


def _reference(x, w1, w2):
    # Pure-JAX reference for correctness checking.
    avg = jnp.mean(x, axis=(2, 3))                 # (B, C)
    mx = jnp.max(x, axis=(2, 3))                   # (B, C)

    def mlp(v):
        return jnp.maximum(v @ w1, 0.0) @ w2

    return jax.nn.sigmoid(mlp(avg) + mlp(mx))[:, :, None, None]


if __name__ == "__main__":
    key = jax.random.PRNGKey(0)
    kx, kp, kx2 = jax.random.split(key, 3)

    B, C, ratio = 2, 8, 4
    w1, w2 = init_params(kp, C, ratio)

    # Case 1: H*W = 256 with hw_tile=128 -> two spatial steps, exercises the
    # running-sum/max accumulator path (no masking needed).
    H, W = 16, 16
    x = jax.random.normal(kx, (B, C, H, W), jnp.float32)
    out = jax.block_until_ready(channel_attention(x, w1, w2, hw_tile=128))
    ref = _reference(x, w1, w2)
    assert out.shape == (B, C, 1, 1)
    assert jnp.allclose(out, ref, atol=1e-5, rtol=1e-5)

    # Case 2: H*W = 320 with hw_tile=128 -> partial trailing spatial tile,
    # exercises the masked sum/max path and the true-H*W mean divisor.
    H2, W2 = 16, 20
    x2 = jax.random.normal(kx2, (B, C, H2, W2), jnp.float32)
    out2 = jax.block_until_ready(channel_attention(x2, w1, w2, hw_tile=128))
    ref2 = _reference(x2, w1, w2)
    assert out2.shape == (B, C, 1, 1)
    assert jnp.allclose(out2, ref2, atol=1e-5, rtol=1e-5)

    print("KERNEL_OK")
</pallas_src>

<mosaic_0001>
module attributes {stable_mosaic.version = 11 : i64} {
  func.func @_channel_attention_kernel(%arg0: i32, %arg1: i32, %arg2: memref<2x8x128xf32, #tpu.memory_space<vmem>>, %arg3: memref<8x2xf32, #tpu.memory_space<vmem>>, %arg4: memref<2x8xf32, #tpu.memory_space<vmem>>, %arg5: memref<2x8xf32, #tpu.memory_space<vmem>>, %arg6: memref<2x8xf32, #tpu.memory_space<vmem>>, %arg7: memref<2x8xf32, #tpu.memory_space<vmem>>) attributes {dimension_semantics = [#tpu.dimension_semantics<parallel>, #tpu.dimension_semantics<arbitrary>], iteration_bounds = array<i64: 1, 2>, scalar_prefetch = 0 : i64, scratch_operands = 2 : i64, tpu.core_type = #tpu.core_type<tc>, window_params = [{transform_indices = @transform_0, window_bounds = array<i64: 2, 8, 128>}, {pipeline_mode = #tpu.pipeline_mode<synchronous>, transform_indices = @transform_1, window_bounds = array<i64: 8, 2>}, {pipeline_mode = #tpu.pipeline_mode<synchronous>, transform_indices = @transform_2, window_bounds = array<i64: 2, 8>}, {transform_indices = @transform_3, window_bounds = array<i64: 2, 8>}]} {
    %c0_i32 = arith.constant 0 : i32
    %0 = arith.cmpi eq, %arg1, %c0_i32 : i32
    %1 = arith.extui %0 : i1 to i32
    %c0_i32_0 = arith.constant 0 : i32
    %2 = arith.cmpi ne, %1, %c0_i32_0 : i32
    scf.if %2 {
      %cst_13 = arith.constant 0.000000e+00 : f32
      %15 = vector.broadcast %cst_13 : f32 to vector<2x8xf32>
      %c0_14 = arith.constant 0 : index
      %c0_15 = arith.constant 0 : index
      %16 = vector.load %arg6[%c0_14, %c0_15] : memref<2x8xf32, #tpu.memory_space<vmem>>, vector<2x8xf32>
      tpu.vector_store %arg6[%c0_14, %c0_15], %15 {strides = array<i32>} : memref<2x8xf32, #tpu.memory_space<vmem>>, vector<2x8xf32>,
      %cst_16 = arith.constant 0xFF800000 : f32
      %17 = vector.broadcast %cst_16 : f32 to vector<2x8xf32>
      %c0_17 = arith.constant 0 : index
      %c0_18 = arith.constant 0 : index
      %18 = vector.load %arg7[%c0_17, %c0_18] : memref<2x8xf32, #tpu.memory_space<vmem>>, vector<2x8xf32>
      tpu.vector_store %arg7[%c0_17, %c0_18], %17 {strides = array<i32>} : memref<2x8xf32, #tpu.memory_space<vmem>>, vector<2x8xf32>,
    } else {
    }
    %c0 = arith.constant 0 : index
    %c0_1 = arith.constant 0 : index
    %c0_2 = arith.constant 0 : index
    %3 = vector.load %arg2[%c0, %c0_1, %c0_2] : memref<2x8x128xf32, #tpu.memory_space<vmem>>, vector<2x8x128xf32>
    %c0_3 = arith.constant 0 : index
    %c0_4 = arith.constant 0 : index
    %4 = vector.load %arg6[%c0_3, %c0_4] : memref<2x8xf32, #tpu.memory_space<vmem>>, vector<2x8xf32>
    %cst = arith.constant dense<0.000000e+00> : vector<2x8xf32>
    %5 = vector.multi_reduction <add>, %3, %cst [2] : vector<2x8x128xf32> to vector<2x8xf32>
    %6 = arith.addf %4, %5 : vector<2x8xf32>
    %c0_5 = arith.constant 0 : index
    %c0_6 = arith.constant 0 : index
    %7 = vector.load %arg6[%c0_5, %c0_6] : memref<2x8xf32, #tpu.memory_space<vmem>>, vector<2x8xf32>
    tpu.vector_store %arg6[%c0_5, %c0_6], %6 {strides = array<i32>} : memref<2x8xf32, #tpu.memory_space<vmem>>, vector<2x8xf32>,
    %c0_7 = arith.constant 0 : index
    %c0_8 = arith.constant 0 : index
    %8 = vector.load %arg7[%c0_7, %c0_8] : memref<2x8xf32, #tpu.memory_space<vmem>>, vector<2x8xf32>
    %cst_9 = arith.constant dense<0xFF800000> : vector<2x8xf32>
    %9 = vector.multi_reduction <maximumf>, %3, %cst_9 [2] : vector<2x8x128xf32> to vector<2x8xf32>
    %10 = arith.maximumf %8, %9 : vector<2x8xf32>
    %c0_10 = arith.constant 0 : index
    %c0_11 = arith.constant 0 : index
    %11 = vector.load %arg7[%c0_10, %c0_11] : memref<2x8xf32, #tpu.memory_space<vmem>>, vector<2x8xf32>
    tpu.vector_store %arg7[%c0_10, %c0_11], %10 {strides = array<i32>} : memref<2x8xf32, #tpu.memory_space<vmem>>, vector<2x8xf32>,
    %c1_i32 = arith.constant 1 : i32
    %12 = arith.cmpi eq, %arg1, %c1_i32 : i32
    %13 = arith.extui %12 : i1 to i32
    %c0_i32_12 = arith.constant 0 : i32
    %14 = arith.cmpi ne, %13, %c0_i32_12 : i32
    scf.if %14 {
      %c0_13 = arith.constant 0 : index
      %c0_14 = arith.constant 0 : index
      %15 = vector.load %arg6[%c0_13, %c0_14] : memref<2x8xf32, #tpu.memory_space<vmem>>, vector<2x8xf32>
      %cst_15 = arith.constant 3.906250e-03 : f32
      %16 = vector.broadcast %cst_15 : f32 to vector<2x8xf32>
      %17 = arith.mulf %15, %16 : vector<2x8xf32>
      %c0_16 = arith.constant 0 : index
      %c0_17 = arith.constant 0 : index
      %18 = vector.load %arg7[%c0_16, %c0_17] : memref<2x8xf32, #tpu.memory_space<vmem>>, vector<2x8xf32>
      %19 = tpu.concatenate %17, %18 in 0 : vector<2x8xf32>, vector<2x8xf32> -> vector<4x8xf32>
      %c0_18 = arith.constant 0 : index
      %c0_19 = arith.constant 0 : index
      %20 = vector.load %arg3[%c0_18, %c0_19] : memref<8x2xf32, #tpu.memory_space<vmem>>, vector<8x2xf32>
      %c0_20 = arith.constant 0 : index
      %c0_21 = arith.constant 0 : index
      %21 = vector.load %arg4[%c0_20, %c0_21] : memref<2x8xf32, #tpu.memory_space<vmem>>, vector<2x8xf32>
      %cst_22 = arith.constant dense<0.000000e+00> : vector<4x2xf32>
      %22 = tpu.matmul %19, %20, %cst_22 {dimension_numbers = #tpu.dot_dimension_numbers<[1], [0], [0], [1], [0, 0, 1, 1], [], []>} : vector<4x8xf32>, vector<8x2xf32>, vector<4x2xf32> -> vector<4x2xf32>
      %cst_23 = arith.constant 0.000000e+00 : f32
      %23 = vector.broadcast %cst_23 : f32 to vector<4x2xf32>
      %24 = arith.maximumf %22, %23 : vector<4x2xf32>
      %cst_24 = arith.constant dense<0.000000e+00> : vector<4x8xf32>
      %25 = tpu.matmul %24, %21, %cst_24 {dimension_numbers = #tpu.dot_dimension_numbers<[1], [0], [0], [1], [0, 0, 1, 1], [], []>} : vector<4x2xf32>, vector<2x8xf32>, vector<4x8xf32> -> vector<4x8xf32>
      %26 = vector.extract_strided_slice %25 {offsets = [0, 0], sizes = [2, 8], strides = [1, 1]} : vector<4x8xf32> to vector<2x8xf32>
      %27 = vector.extract_strided_slice %25 {offsets = [2, 0], sizes = [2, 8], strides = [1, 1]} : vector<4x8xf32> to vector<2x8xf32>
      %28 = arith.addf %26, %27 : vector<2x8xf32>
      %29 = arith.negf %28 : vector<2x8xf32>
      %30 = math.exp %29 : vector<2x8xf32>
      %cst_25 = arith.constant 1.000000e+00 : f32
      %31 = vector.broadcast %cst_25 : f32 to vector<2x8xf32>
      %32 = arith.addf %31, %30 : vector<2x8xf32>
      %33 = arith.divf %31, %32 : vector<2x8xf32>
      %c0_26 = arith.constant 0 : index
      %c0_27 = arith.constant 0 : index
      %34 = vector.load %arg5[%c0_26, %c0_27] : memref<2x8xf32, #tpu.memory_space<vmem>>, vector<2x8xf32>
      tpu.vector_store %arg5[%c0_26, %c0_27], %33 {strides = array<i32>} : memref<2x8xf32, #tpu.memory_space<vmem>>, vector<2x8xf32>,
    } else {
    }
    return
  }
  func.func @transform_0(%arg0: i32, %arg1: i32) -> (i32, i32, i32) {
    %c0_i32 = arith.constant 0 : i32
    %c0_i32_0 = arith.constant 0 : i32
    return %arg0, %c0_i32, %arg1 : i32, i32, i32
  }
  func.func @transform_1(%arg0: i32, %arg1: i32) -> (i32, i32) {
    %c0_i32 = arith.constant 0 : i32
    %c0_i32_0 = arith.constant 0 : i32
    %c0_i32_1 = arith.constant 0 : i32
    return %c0_i32, %c0_i32_0 : i32, i32
  }
  func.func @transform_2(%arg0: i32, %arg1: i32) -> (i32, i32) {
    %c0_i32 = arith.constant 0 : i32
    %c0_i32_0 = arith.constant 0 : i32
    %c0_i32_1 = arith.constant 0 : i32
    return %c0_i32, %c0_i32_0 : i32, i32
  }
  func.func @transform_3(%arg0: i32, %arg1: i32) -> (i32, i32) {
    %c0_i32 = arith.constant 0 : i32
    %c0_i32_0 = arith.constant 0 : i32
    return %arg0, %c0_i32 : i32, i32
  }
}

</mosaic_0001>

<bundles_post_ra>
// kernel: tpu_custom_call.1
= control target key start
LH: loop header
LB: loop body
LE: loop exit
PB: predicated region body
PF: predicated region fallthrough
CT: control target
= control target key end

     0   :  { %8 = vsyncpa [#allocation5], 0  ;;  %s906_s0 = inlined_call_operand.hbm [shape: f32[2,8,256], index: 0, kind: input, shape index: {}]   ;;  %s907_s1 = inlined_call_operand.vmem [shape: f32[8,2], index: 1, kind: input, shape index: {}]   ;;  %s908_s2 = inlined_call_operand.vmem [shape: f32[2,8], index: 2, kind: input, shape index: {}]   ;;  %s909_s3 = inlined_call_operand.hbm [shape: f32[2,8], index: 3, kind: output, shape index: {}]  }
   0x1   :  { %10 = vsyncpa [#allocation5 + $0x1], 0 }
   0x2   :  { %11 = vsyncpa [#allocation6], 0  ;;  %s744_s12 = smov 0   ;;  %s746_s13 = smov 0  }
   0x3   :  { %s748_s14 = smov 0   ;;  %s750_s15 = smov 0  }
   0x4   :  { %s752_s16 = smov 0   ;;  %s754_s17 = smov 0  }
   0x5 LB: > { %s499_s18 = sadd.s32 4294967295, %s713_s17   ;;  %s26_s19 = sadd.s32 1, %s709_s16  ;;  %s713_s17 = sphi %s754_s17, %s17_s17   ;;  %s709_s16 = sphi %s752_s16, %s919_s16   ;;  %s705_s15 = sphi %s750_s15, %s918_s15   ;;  %s701_s14 = sphi %s748_s14, %s917_s14   ;;  %s697_s13 = sphi %s746_s13, %s916_s13   ;;  %s693_s12 = sphi %s744_s12, %s915_s12  }
   0x6   : > { %p27_p0 = scmp.ge.s32.totalorder %s26_s19, 2  ;;  %s38_s20 = sadd.s32 1, %s701_s14 }
   0x7   : > { %p45_p1 = scmp.ne.s32.totalorder %s701_s14, %s697_s13  ;;  %p46_p2 = scmp.eq.s32.totalorder %s713_s17, 0 }
   0x8   : > { %s921_s19 = smov (%p27_p0, %s26_s19), 0  ;;  %p51_p4 = scmp.ne.s32.totalorder %s697_s13, %s693_s12 }
   0x9   : > { %p780_p3 = por %p46_p2, %p45_p1  ;;  %s34_s22 = ssub.s32 %s709_s16, %s921_s19 }
   0xa   : > { %p52_p5 = scmp.eq.s32.totalorder %s499_s18, 0  ;;  %p36_p6 = scmp.eq.s32.totalorder %s34_s22, 0 }
   0xb   : > { %p540_p8 = scmp.lt.s32.totalorder %s713_s17, 2  ;;  %s149_s25 = sand.u32 1, %s701_s14  }
   0xc   : > { %p789_p7 = por %p52_p5, %p51_p4  ;;  %s503_s26 = sshll.u32 %s709_s16, 7 }
   0xd   : > { %s795_s24 = scalar_select %p36_p6, %s701_s14, %s38_s20  }
   0xe   : > { %s502_s27 = sshll.u32 %s149_s25, 4  ;;  %s802_s30 = scalar_lea.hbm %s906_s0, %s503_s26 }
   0xf   : > { %s153_s4 = scalar_lea.vmem [#allocation4], %s502_s27  ;;  %p806_p9 = pnand %p540_p8, %p780_p3 }
  0x10   : > { %s162_s5 = sshll.u32 %s153_s4, 4  ;;  %s813_s7 = scalar_lea.sflag [#allocation5], %s149_s25  ;;  %s810_s5 = int_to_ptr.vmem [resolvable:$true] %s162_s5 }
  0x11   : > { %s603_s8 = scalar_lea.hbm %s802_s30, 256  ;;  %p605_p12 = pneg %p806_p9 }
  0x12   : > { %p604_p11 = scmp.ne.s32.totalorder %s802_s30, %s603_s8  ;;  %s608_s11 = scalar_lea.hbm %s906_s0, 512 }
  0x13   : > { %p609_p1 = scmp.lt.u32.totalorder %s802_s30, %s906_s0  ;;  %p610_p2 = scmp.lt.u32.totalorder %s608_s11, %s603_s8 }
  0x14   : > { %p606_p13 = pnand %p605_p12, %p604_p11  ;;  %p612_p4 = scmp.lt.u32.totalorder %s603_s8, %s802_s30 }
  0x15   : > { %p611_p3 = por %p610_p2, %p609_p1 }
  0x16   : > { %p607_p0 = pneg %p606_p13 }
  0x17   : > { %p613_p5 = por %p612_p4, %p611_p3 }
  0x19   : > { %p614_p6 = pnand %p613_p5, %p607_p0 }
  0x1b   : > { %617 = shalt.err (!%p614_p6)
}
  0x1c   : > { %s618_s21 = scalar_lea.vmem %s810_s5, 256  ;;  %s715_s22 = smov [#allocation4]  }
  0x1d   : > { %p619_p8 = scmp.ne.s32.totalorder %s810_s5, %s618_s21  ;;  %s623_s25 = sshll.u32 %s715_s22, 4  ;;  %s624_s25 = int_to_ptr.vmem [resolvable:$false] %s623_s25 }
  0x1e   : > { %s625_s26 = scalar_lea.vmem %s624_s25, 512  ;;  %p626_p10 = scmp.lt.s32.totalorder %s810_s5, %s624_s25 }
  0x1f   : > { %p621_p11 = pnand %p619_p8, %p605_p12  ;;  %p627_p1 = scmp.lt.s32.totalorder %s625_s26, %s618_s21 }
  0x21   : > { %p622_p13 = pneg %p621_p11  ;;  %p628_p2 = por %p627_p1, %p626_p10 }
  0x23   : > { %p629_p3 = pnand %p628_p2, %p622_p13 }
  0x25   : > { %632 = shalt.err (!%p629_p3)
}
  0x26   : > { %s716_s27 = smov 256   ;;  %s717_s28 = smov 128  }
  0x27   : > { %s718_s29 = smov 8   ;;  %p170_p12 = scmp.lt.s32.totalorder %s713_s17, 3 }
  0x28   : > { %539 = dma.hbm_to_vmem [thread:$0]  (!%p806_p9), %s802_s30, 256, %s810_s5, %s813_s7, %s716_s27, %s717_s28, %s718_s29  }
  0x29   : > { %p913_p0 = scmp.ge.s32.totalorder %s713_s17, 1 }
  0x2b   : > { %p171_p4 = pnand %p913_p0, %p170_p12 }
  0x2c   : > { %s176_s4 = sand.u32 (!%p171_p4), 1, %s697_s13  }
  0x2d   : > { %174 = sbr.rel (%p171_p4) target bundleno = 707 (0x2c3), region = 32  ;;  %s505_s8 = sshll.u32 (!%p171_p4), %s176_s4, 4 }
  0x2e   : > { %s177_s9 = scalar_lea.sflag (!%p171_p4), [#allocation5], %s176_s4  ;;  %s180_s10 = scalar_lea.vmem (!%p171_p4), [#allocation4], %s505_s8 }
  0x34   : > { %684 = dma.done.wait (%p789_p7), %s177_s9, 256  }
  0x35   : > { %686 = vsyncadd (%p789_p7), %s177_s9, 4294967040  ;;  %p506_p10 = scmp.ne.s32.totalorder %s705_s15, 0 }
  0x36   : > { %vm203_vm0 = vcmask (!%p506_p10), 58368   ;;  %v719_v0 = vmov (!%p506_p10), 0.0   ;;  %v720_v1 = vmov (!%p506_p10), -inf  }
  0x37   : > { %202 = sbr.rel (%p506_p10) target bundleno = 62 (0x3e), region = 40  ;;  %204 = vst.msk [vmem:[#allocation2] sm:$0x3] (!%p506_p10), %vm203_vm0, %v719_v0  ;;  %205 = vst.msk [vmem:[#allocation3] sm:$0x3] (!%p506_p10), %vm203_vm0, %v720_v1 }
  0x3e PF: > { %v206_v2 = vld [vmem:[%s180_s10] sm:$0xff]  ;;  %v207_v3 = vld [vmem:[%s180_s10 + $0x8] sm:$0xff]  ;;  %v215_v4 = vlaneseq  ;;  %vm225_vm1 = vcmask 1041409   ;;  %vm229_vm2 = vcmask 58368   ;;  %p507_p7 = scmp.ne.s32.totalorder %s705_s15, 1 }
  0x3f   : > { %232 = vmax.xlane.f32.xlu1 %v206_v2  ;;  %209 = vadd.xlane.f32.xlu0 %v206_v2  ;;  %v231_v14 = vld [vmem:[#allocation3] sm:$0x3]  ;;  %v208_v16 = vld [vmem:[#allocation2] sm:$0x3]  ;;  %v721_v24 = vmov (!%p507_p7), 0.0   ;;  %vm722_vm3 = vmmov (!%p507_p7), 0  }
  0x40   : > { %v216_v5 = vand.u32 127, %v215_v4  ;;  %v218_v6 = vshrl.u32 %v215_v4, 7  ;;  %v262_v22 = vld [vmem:[%s907_s1] sm:$0xff] (!%p507_p7)  ;;  %520 = vmatprep.subr.mxu0 (!%p507_p7), %v721_v24  ;;  %522 = vmatprep.mubr.msk.f32.mxu0 (!%p507_p7), %vm722_vm3, %v721_v24  ;;  %vm260_vm4 = vcmask (!%p507_p7), 1041408   ;;  %vm264_vm5 = vcmask (!%p507_p7), 64512  }
  0x41   : > { %521 = vmatpush3.msra.mxu0 (!%p507_p7), %v262_v22  ;;  %525 = vmatprep.subr.mxu1 (!%p507_p7), %v721_v24  ;;  %v263_v29 = vld [vmem:[%s908_s2] sm:$0x3] (!%p507_p7)  ;;  %vm339_vm6 = vcmask (!%p507_p7), 15360  }
  0x42   : > { %v219_v9 = vsub.s32 %v216_v5, %v218_v6  ;;  %527 = vmatprep.mubr.msk.f32.mxu1 (!%p507_p7), %vm722_vm3, %v721_v24  ;;  %526 = vmatpush3.msk.msra.mxu1 (!%p507_p7), %vm260_vm4, %v263_v29 }
  0x43   : > { %234 = vmax.xlane.f32.xlu1 %v207_v3  ;;  %211 = vadd.xlane.f32.xlu0 %v207_v3 }
  0xcc   : > { %v233_v7 = vpop.xlane.xlu1 %232  ;;  %v210_v8 = vpop.xlane.xlu0 %209 }
  0xcd   : > { %v241_v12 = vrot.slane %v233_v7, %v219_v9  ;;  %v220_v13 = vrot.slane %v210_v8, %v219_v9 }
  0xd0   : > { %v235_v10 = vpop.xlane.xlu1 %234  ;;  %v212_v11 = vpop.xlane.xlu0 %211  ;;  %253 = sbr.rel (%p507_p7) target bundleno = 682 (0x2aa), region = 44 }
  0xd1   : > { %v245_v15 = vrot.slane %v235_v10, %v219_v9  ;;  %v224_v17 = vrot.slane %v212_v11, %v219_v9 }
  0xd3   : > { %v246_v18 = vsel %vm225_vm1, %v245_v15, %v241_v12  ;;  %v226_v19 = vsel %vm225_vm1, %v224_v17, %v220_v13 }
  0xd4   : > { %v248_v20 = vmax.f32 %v231_v14, %v246_v18  ;;  %v228_v21 = vadd.f32 %v226_v19, %v208_v16 }
  0xd6   : > { %249 = vst.msk [vmem:[#allocation3] sm:$0x3] %vm229_vm2, %v248_v20  ;;  %230 = vst.msk [vmem:[#allocation2] sm:$0x3] %vm229_vm2, %v228_v21 }
  0xdd   : > { %v254_v23 = vld [vmem:[#allocation2] sm:$0x3]  ;;  %v256_v26 = vld [vmem:[#allocation3] sm:$0x3] }
  0xde   : > { %v255_v25 = vmul.f32 0.00390625, %v254_v23  ;;  %v258_v27 = vrot.slane %v256_v26, 6 }
  0xe0   : > { %v261_v28 = vsel %vm260_vm4, %v255_v25, %v258_v27 }
  0xe1   : > { %523 = vmatmul.mubr.msk.f32.vlgmr.msra.gmra.mrb[0].mxu0 %vm264_vm5, %v261_v28 }
 0x1b4   : > { %v334_v30 = vpop.f32.mrb[0].mxu0 }
 0x1b5   : > { %v338_v31 = vmax.f32 %v334_v30, 0.0  ;;  %v524_v32 = vpop.f32.mrb[1].mxu0 }
 0x1b7   : > { %528 = vmatmul.mubr.msk.f32.vlgmr.msra.gmra.mrb[0].mxu1 %vm339_vm6, %v338_v31 }
 0x28a   : > { %v412_v33 = vpop.f32.mrb[0].mxu1 }
 0x28b   : > { %v417_v34 = vrot.slane %v412_v33, 2  ;;  %v529_v35 = vpop.f32.mrb[1].mxu1 }
 0x28d   : > { %v419_v36 = vadd.f32 %v417_v34, %v412_v33 }
 0x28f   : > { %v511_v37 = vmul.f32 -1.442695, %v419_v36 }
 0x291   : > { %599 = vpow2.f32 %v511_v37 }
 0x29b   : > { %v600_v38 = vpop.eup %599 }
 0x29c   : > { %v423_v39 = vadd.f32 1.0, %v600_v38 }
 0x29e   : > { %601 = vrcp.f32 %v423_v39 }
 0x2a8   : > { %v602_v40 = vpop.eup %601 }
 0x2a9   : > { %426 = vst.msk [vmem:[#allocation7] sm:$0x3] %vm229_vm2, %v602_v40 }
 0x2aa PF: > { %p862_p9 = scmp.eq.s32.totalorder %s499_s18, 1  ;;  %s723_s7 = smov [#allocation7]  }
 0x2ab   : > { %s436_s11 = sshll.u32 %s723_s7, 4  ;;  %s437_s11 = int_to_ptr.vmem [resolvable:$true] %s436_s11 }
 0x2ac   : > { %s633_s12 = scalar_lea.vmem %s437_s11, 32  ;;  %p640_p11 = scmp.lt.s32.totalorder %s437_s11, %s437_s11 }
 0x2ad   : > { %p634_p5 = scmp.ne.s32.totalorder %s437_s11, %s633_s12  ;;  %p641_p13 = scmp.lt.s32.totalorder %s633_s12, %s633_s12 }
 0x2af   : > { %p635_p6 = pnand %p634_p5, %p862_p9  ;;  %p642_p1 = por %p641_p13, %p640_p11 }
 0x2b1   : > { %p636_p8 = pneg %p635_p6 }
 0x2b3   : > { %p643_p2 = pnand %p642_p1, %p636_p8 }
 0x2b5   : > { %646 = shalt.err (!%p643_p2)
}
 0x2b6   : > { %s647_s18 = scalar_lea.hbm %s909_s3, 32 }
 0x2b7   : > { %p648_p3 = scmp.ne.s32.totalorder %s909_s3, %s647_s18  ;;  %p653_p4 = scmp.lt.u32.totalorder %s647_s18, %s909_s3 }
 0x2b9   : > { %p649_p12 = pnand %p648_p3, %p862_p9 }
 0x2bb   : > { %p650_p0 = pneg %p649_p12 }
 0x2bd   : > { %p655_p10 = pnand %p653_p4, %p650_p0 }
 0x2bf   : > { %658 = shalt.err (!%p655_p10)
}
 0x2c0   : > { %533 = dma.vmem_to_hbm [thread:$0]  (%p862_p9), %s437_s11, 32, %s909_s3, [#allocation6]  }
 0x2c1   : > { %688 = dma.done.wait (%p862_p9), [#allocation6], 32  }
 0x2c2   : > { %690 = vsyncadd (%p862_p9), [#allocation6], 4294967264 }
 0x2c3 PF: > { %s17_s17 = sadd.s32 1, %s713_s17   ;;  %s915_s12 = smov %s697_s13 }
 0x2c4   : > { %p14_p7 = scmp.ge.s32.totalorder %s17_s17, 4   ;;  %s916_s13 = smov %s701_s14 }
 0x2c5   : > { %s917_s14 = smov %s795_s24  ;;  %s918_s15 = smov %s709_s16 }
 0x2c6   : > { %s919_s16 = smov %s921_s19  ;;  %16 = sbr.rel (!%p14_p7) target bundleno = 5 (0x5), region = 78 }
 0x2cd   :  { %449 = vsyncpa [#allocation5], 1 }
 0x2ce   :  { %451 = vsyncpa [#allocation5 + $0x1], 1 }
 0x2cf   :  { %452 = vsyncpa [#allocation6], 1 }
 0x2d0   :  { %454 = vsyncpa [#allocation6 + $0x1], 1 }

</bundles_post_ra>
